<compile_context>
chip_gen: v5e
topology: v5e:2x2
jax: 0.10.0
libtpu: 0.0.40
codegen_flags: <defaults>
</compile_context>

<pallas_src>
import functools

import jax
import jax.numpy as jnp
from jax.experimental import pallas as pl
from jax.experimental.pallas import tpu as pltpu


# ----------------------------------------------------------------------------
# Fused Pallas kernel
# ----------------------------------------------------------------------------
def _gnn_actor_kernel(a_ref, h_ref, *refs, batch, node_num, feature_dim,
                      n_gnn, n_mlp, node_pad):
    """Fully fused, batched GNNActor forward.

    refs layout (after a_ref, h_ref):
      gnn weights (n_gnn)                    -- (Fin, Fout) each
      MLP (weight, bias) pairs (2 * n_mlp)   -- first weight zero-padded to
                                                (N*node_pad, hidden0)
      act                                    -- SMEM (B, 1) int32
      outputs: logits (B, A), log_probs (B, A), log_a (B, 1)
      scratch: flat (B, N*node_pad) VMEM
    """
    gnn_w_refs = refs[:n_gnn]
    mlp_refs = refs[n_gnn:n_gnn + 2 * n_mlp]
    act_ref = refs[n_gnn + 2 * n_mlp]
    logits_ref, logp_ref, loga_ref = refs[n_gnn + 2 * n_mlp + 1:
                                          n_gnn + 2 * n_mlp + 4]
    flat_ref = refs[-1]

    B, N, F = batch, node_num, feature_dim
    n_act = logits_ref.shape[1]

    # --- GNN stack, batched across B -------------------------------------
    a = a_ref[...]                                     # (B, N, N), read once
    hmat = h_ref[...].reshape(B * N, F)                # layout no-op reshape

    for w_ref in gnn_w_refs:
        w = w_ref[...]                                 # read once
        support = jnp.dot(hmat.astype(w.dtype), w,
                          preferred_element_type=jnp.float32)   # (B*N, Fout)
        support = support.reshape(B, N, w.shape[1])
        h3 = jnp.einsum('bij,bjk->bik', a, support.astype(a.dtype),
                        preferred_element_type=jnp.float32)
        h3 = jnp.maximum(h3, 0.0)                      # relu in f32
        hmat = h3.reshape(B * N, w.shape[1])           # (B*N, Fout)

    # --- flatten(H) @ W_mlp0 as ONE matmul --------------------------------
    # Scatter each node's F features into a lane-aligned 128-wide slot of the
    # scratch row; the weight was zero-padded to match in the wrapper.
    flat_ref[...] = jnp.zeros_like(flat_ref)
    for b in range(B):
        for n in range(N):
            r = b * N + n
            flat_ref[b:b + 1, n * node_pad:n * node_pad + F] = (
                hmat[r:r + 1, :].astype(flat_ref.dtype))

    w0 = mlp_refs[0][...]                              # (N*node_pad, hidden0)
    b0 = mlp_refs[1][...]                              # (1, hidden0) f32
    x = jnp.dot(flat_ref[...], w0,
                preferred_element_type=jnp.float32) + b0       # (B, hidden0)
    if n_mlp > 1:
        x = jnp.tanh(x)

    # --- remaining MLP layers (Identity on the last one), batched ---------
    for li in range(1, n_mlp):
        w = mlp_refs[2 * li][...]
        bb = mlp_refs[2 * li + 1][...]
        x = jnp.dot(x.astype(w.dtype), w,
                    preferred_element_type=jnp.float32) + bb
        if li < n_mlp - 1:
            x = jnp.tanh(x)
    logits = x                                         # (B, n_act) f32

    # --- numerically stable log_softmax, batched ---------------------------
    m = jnp.max(logits, axis=-1, keepdims=True)
    z = logits - m
    lse = jnp.log(jnp.sum(jnp.exp(z), axis=-1, keepdims=True))
    logp = z - lse

    # --- log-prob of the taken action: lane mask vs SMEM scalars -----------
    col = jax.lax.broadcasted_iota(jnp.int32, (B, n_act), 1)
    row = jax.lax.broadcasted_iota(jnp.int32, (B, n_act), 0)
    tgt = jnp.zeros((B, n_act), jnp.int32)
    for b in range(B):
        tgt = jnp.where(row == b, act_ref[b, 0], tgt)
    sel = jnp.where(col == tgt, logp, 0.0)

    logits_ref[...] = logits
    logp_ref[...] = logp
    loga_ref[...] = jnp.sum(sel, axis=-1, keepdims=True)


def gnn_actor_fused_call(a, h0, gnn_ws, mlp_params, act_arr,
                         matmul_dtype=jnp.float32):
    B, N, _ = a.shape
    F = h0.shape[2]
    n_gnn = len(gnn_ws)
    n_mlp = len(mlp_params)
    n_act = mlp_params[-1][0].shape[-1]
    hidden0 = mlp_params[0][0].shape[-1]
    node_pad = ((F + 127) // 128) * 128

    # One-time relayout + zero-pad of the flatten weight (outside the kernel):
    # (N*F, hidden0) -> (N*node_pad, hidden0), rows [n*node_pad+F, (n+1)*node_pad) = 0.
    w0, b0 = mlp_params[0]
    w0pad = jnp.pad(w0.reshape(N, F, hidden0),
                    ((0, 0), (0, node_pad - F), (0, 0)))
    w0pad = w0pad.reshape(N * node_pad, hidden0)

    md = matmul_dtype
    a = a.astype(md)
    h0 = h0.astype(md)
    gnn_ws = [w.astype(md) for w in gnn_ws]
    mlp_args = [w0pad.astype(md), b0.astype(jnp.float32)]
    for w, bb in mlp_params[1:]:
        mlp_args += [w.astype(md), bb.astype(jnp.float32)]

    in_arrays = [a, h0, *gnn_ws, *mlp_args, act_arr]
    in_specs = ([pl.BlockSpec(memory_space=pltpu.MemorySpace.VMEM)
                 for _ in range(len(in_arrays) - 1)]
                + [pl.BlockSpec(memory_space=pltpu.MemorySpace.SMEM)])
    out_specs = (pl.BlockSpec(memory_space=pltpu.MemorySpace.VMEM),
                 pl.BlockSpec(memory_space=pltpu.MemorySpace.VMEM),
                 pl.BlockSpec(memory_space=pltpu.MemorySpace.VMEM))
    out_shape = (
        jax.ShapeDtypeStruct((B, n_act), jnp.float32),
        jax.ShapeDtypeStruct((B, n_act), jnp.float32),
        jax.ShapeDtypeStruct((B, 1), jnp.float32),
    )

    kernel = functools.partial(
        _gnn_actor_kernel, batch=B, node_num=N, feature_dim=F,
        n_gnn=n_gnn, n_mlp=n_mlp, node_pad=node_pad)

    return pl.pallas_call(
        kernel,
        out_shape=out_shape,
        in_specs=in_specs,
        out_specs=out_specs,
        scratch_shapes=[pltpu.VMEM((B, N * node_pad), md)],
    )(*in_arrays)


# ----------------------------------------------------------------------------
# Parameter construction (deterministic, in-script)
# ----------------------------------------------------------------------------
def xavier_uniform(key, shape):
    fan_in, fan_out = shape
    limit = (6.0 / (fan_in + fan_out)) ** 0.5
    return jax.random.uniform(key, shape, jnp.float32, -limit, limit)


def linear_init(key, din, dout):
    # PyTorch nn.Linear default-style bounds ~ 1/sqrt(fan_in)
    kw, kb = jax.random.split(key)
    limit = (1.0 / din) ** 0.5
    w = jax.random.uniform(kw, (din, dout), jnp.float32, -limit, limit)
    b = jax.random.uniform(kb, (1, dout), jnp.float32, -limit, limit)
    return w, b


def init_gnn_actor_params(key, node_num, feature_dim, hidden_size, gnn_layers,
                          hidden_sizes, actions):
    keys = jax.random.split(key, gnn_layers + len(hidden_sizes) + 1)
    gnn_weights = []
    for i in range(gnn_layers):
        if i == 0:
            shape = (feature_dim, hidden_size)
        elif i == gnn_layers - 1:
            shape = (hidden_size, feature_dim)
        else:
            shape = (hidden_size, hidden_size)
        gnn_weights.append(xavier_uniform(keys[i], shape))

    mlp_sizes = [node_num * feature_dim] + list(hidden_sizes) + [actions]
    mlp = []
    for i in range(len(mlp_sizes) - 1):
        mlp.append(linear_init(keys[gnn_layers + i], mlp_sizes[i], mlp_sizes[i + 1]))

    return {
        "node_num": node_num,
        "feature_dim": feature_dim,
        "gnn_weights": gnn_weights,
        "mlp": mlp,
    }


# ----------------------------------------------------------------------------
# GNNActor forward (one fused Pallas kernel)
# ----------------------------------------------------------------------------
def gnn_actor_forward(params, obs, act=None, matmul_dtype=jnp.float32):
    node_num = params["node_num"]
    feature_dim = params["feature_dim"]
    B = obs.shape[0]

    # GNN.forward 3-D branch: split obs into adjacency and node features.
    A_adjust = obs[:, :, :node_num]
    H0 = obs[:, :, node_num:node_num + feature_dim]

    if act is None:
        act_arr = jnp.zeros((B, 1), jnp.int32)
    else:
        act_arr = jnp.asarray(act, jnp.int32).reshape(B, 1)

    logits, log_probs, log_a = gnn_actor_fused_call(
        A_adjust, H0, params["gnn_weights"], params["mlp"], act_arr,
        matmul_dtype=matmul_dtype)

    # Categorical(logits=...) is represented by (logits, log_probs).
    if act is None:
        return (logits, log_probs), None
    return (logits, log_probs), log_a[:, 0]


# ----------------------------------------------------------------------------
# Pure-JAX reference (correctness sanity check)
# ----------------------------------------------------------------------------
def gnn_actor_reference(params, obs, act):
    node_num = params["node_num"]
    feature_dim = params["feature_dim"]
    A = obs[:, :, :node_num]
    H = obs[:, :, node_num:node_num + feature_dim]
    for w in params["gnn_weights"]:
        H = jax.nn.relu(jnp.einsum("bij,bjk->bik", A, jnp.einsum("bnf,fo->bno", H, w)))
    x = H.reshape(H.shape[0], -1)
    n = len(params["mlp"])
    for i, (w, b) in enumerate(params["mlp"]):
        x = x @ w + b[0]
        if i < n - 1:
            x = jnp.tanh(x)
    lp = jax.nn.log_softmax(x, axis=-1)
    la = jnp.take_along_axis(lp, act[:, None].astype(jnp.int32), axis=1)[:, 0]
    return x, lp, la


# ----------------------------------------------------------------------------
if __name__ == "__main__":
    B = 2            # batch
    NODE_NUM = 8
    FEATURE_DIM = 4
    HIDDEN_SIZE = 16
    GNN_LAYERS = 3
    HIDDEN_SIZES = (32,)
    ACTIONS = 6

    key = jax.random.PRNGKey(0)
    k_params, k_obs, k_act = jax.random.split(key, 3)

    params = init_gnn_actor_params(
        k_params, NODE_NUM, FEATURE_DIM, HIDDEN_SIZE, GNN_LAYERS, HIDDEN_SIZES, ACTIONS
    )

    # obs: (B, node_num, node_num + feature_dim)
    obs = jax.random.normal(k_obs, (B, NODE_NUM, NODE_NUM + FEATURE_DIM), jnp.float32)
    act = jax.random.randint(k_act, (B,), 0, ACTIONS)

    (logits, log_probs), log_a = gnn_actor_forward(params, obs, act)
    jax.block_until_ready((logits, log_probs, log_a))

    # Sanity check against the pure-JAX reference.
    ref_logits, ref_lp, ref_la = gnn_actor_reference(params, obs, act)
    assert jnp.allclose(logits, ref_logits, atol=1e-4, rtol=1e-4)
    assert jnp.allclose(log_probs, ref_lp, atol=1e-4, rtol=1e-4)
    assert jnp.allclose(log_a, ref_la, atol=1e-4, rtol=1e-4)

    # act=None path (policy only), as in GNNActor.forward(obs).
    (logits2, log_probs2), none_la = gnn_actor_forward(params, obs, None)
    jax.block_until_ready((logits2, log_probs2))
    assert none_la is None
    assert jnp.allclose(logits2, ref_logits, atol=1e-4, rtol=1e-4)

    print("KERNEL_OK")
</pallas_src>

<mosaic_0001>
module attributes {stable_mosaic.version = 11 : i64} {
  func.func @_gnn_actor_kernel(%arg0: memref<2x8x8xf32, #tpu.memory_space<vmem>>, %arg1: memref<2x8x4xf32, #tpu.memory_space<vmem>>, %arg2: memref<4x16xf32, #tpu.memory_space<vmem>>, %arg3: memref<16x16xf32, #tpu.memory_space<vmem>>, %arg4: memref<16x4xf32, #tpu.memory_space<vmem>>, %arg5: memref<1024x32xf32, #tpu.memory_space<vmem>>, %arg6: memref<1x32xf32, #tpu.memory_space<vmem>>, %arg7: memref<32x6xf32, #tpu.memory_space<vmem>>, %arg8: memref<1x6xf32, #tpu.memory_space<vmem>>, %arg9: memref<2x1xi32, #tpu.memory_space<smem>>, %arg10: memref<2x6xf32, #tpu.memory_space<vmem>>, %arg11: memref<2x6xf32, #tpu.memory_space<vmem>>, %arg12: memref<2x1xf32, #tpu.memory_space<vmem>>, %arg13: memref<2x1024xf32, #tpu.memory_space<vmem>>) attributes {dimension_semantics = [], scalar_prefetch = 0 : i64, scratch_operands = 1 : i64, tpu.core_type = #tpu.core_type<tc>} {
    %c0 = arith.constant 0 : index
    %c0_0 = arith.constant 0 : index
    %c0_1 = arith.constant 0 : index
    %0 = vector.load %arg0[%c0, %c0_0, %c0_1] : memref<2x8x8xf32, #tpu.memory_space<vmem>>, vector<2x8x8xf32>
    %c0_2 = arith.constant 0 : index
    %c0_3 = arith.constant 0 : index
    %c0_4 = arith.constant 0 : index
    %1 = vector.load %arg1[%c0_2, %c0_3, %c0_4] : memref<2x8x4xf32, #tpu.memory_space<vmem>>, vector<2x8x4xf32>
    %2 = vector.shape_cast %1 : vector<2x8x4xf32> to vector<16x4xf32>
    %c0_5 = arith.constant 0 : index
    %c0_6 = arith.constant 0 : index
    %3 = vector.load %arg2[%c0_5, %c0_6] : memref<4x16xf32, #tpu.memory_space<vmem>>, vector<4x16xf32>
    %cst = arith.constant dense<0.000000e+00> : vector<16x16xf32>
    %4 = tpu.matmul %2, %3, %cst {dimension_numbers = #tpu.dot_dimension_numbers<[1], [0], [0], [1], [0, 0, 1, 1], [], []>} : vector<16x4xf32>, vector<4x16xf32>, vector<16x16xf32> -> vector<16x16xf32>
    %5 = vector.shape_cast %4 : vector<16x16xf32> to vector<2x8x16xf32>
    "tpu.trace_start"() <{level = 10 : i32, message = "bij,bjk->bik"}> : () -> ()
    %cst_7 = arith.constant dense<0.000000e+00> : vector<2x8x16xf32>
    %6 = tpu.matmul %0, %5, %cst_7 {dimension_numbers = #tpu.dot_dimension_numbers<[2], [1], [1], [2], [0, 0, 0, 1, 1, 2], [0], [0]>} : vector<2x8x8xf32>, vector<2x8x16xf32>, vector<2x8x16xf32> -> vector<2x8x16xf32>
    "tpu.trace_stop"() : () -> ()
    %cst_8 = arith.constant 0.000000e+00 : f32
    %7 = vector.broadcast %cst_8 : f32 to vector<2x8x16xf32>
    %8 = arith.maximumf %6, %7 : vector<2x8x16xf32>
    %9 = vector.shape_cast %8 : vector<2x8x16xf32> to vector<16x16xf32>
    %c0_9 = arith.constant 0 : index
    %c0_10 = arith.constant 0 : index
    %10 = vector.load %arg3[%c0_9, %c0_10] : memref<16x16xf32, #tpu.memory_space<vmem>>, vector<16x16xf32>
    %cst_11 = arith.constant dense<0.000000e+00> : vector<16x16xf32>
    %11 = tpu.matmul %9, %10, %cst_11 {dimension_numbers = #tpu.dot_dimension_numbers<[1], [0], [0], [1], [0, 0, 1, 1], [], []>} : vector<16x16xf32>, vector<16x16xf32>, vector<16x16xf32> -> vector<16x16xf32>
    %12 = vector.shape_cast %11 : vector<16x16xf32> to vector<2x8x16xf32>
    "tpu.trace_start"() <{level = 10 : i32, message = "bij,bjk->bik"}> : () -> ()
    %cst_12 = arith.constant dense<0.000000e+00> : vector<2x8x16xf32>
    %13 = tpu.matmul %0, %12, %cst_12 {dimension_numbers = #tpu.dot_dimension_numbers<[2], [1], [1], [2], [0, 0, 0, 1, 1, 2], [0], [0]>} : vector<2x8x8xf32>, vector<2x8x16xf32>, vector<2x8x16xf32> -> vector<2x8x16xf32>
    "tpu.trace_stop"() : () -> ()
    %cst_13 = arith.constant 0.000000e+00 : f32
    %14 = vector.broadcast %cst_13 : f32 to vector<2x8x16xf32>
    %15 = arith.maximumf %13, %14 : vector<2x8x16xf32>
    %16 = vector.shape_cast %15 : vector<2x8x16xf32> to vector<16x16xf32>
    %c0_14 = arith.constant 0 : index
    %c0_15 = arith.constant 0 : index
    %17 = vector.load %arg4[%c0_14, %c0_15] : memref<16x4xf32, #tpu.memory_space<vmem>>, vector<16x4xf32>
    %cst_16 = arith.constant dense<0.000000e+00> : vector<16x4xf32>
    %18 = tpu.matmul %16, %17, %cst_16 {dimension_numbers = #tpu.dot_dimension_numbers<[1], [0], [0], [1], [0, 0, 1, 1], [], []>} : vector<16x16xf32>, vector<16x4xf32>, vector<16x4xf32> -> vector<16x4xf32>
    %19 = vector.shape_cast %18 : vector<16x4xf32> to vector<2x8x4xf32>
    "tpu.trace_start"() <{level = 10 : i32, message = "bij,bjk->bik"}> : () -> ()
    %cst_17 = arith.constant dense<0.000000e+00> : vector<2x8x4xf32>
    %20 = tpu.matmul %0, %19, %cst_17 {dimension_numbers = #tpu.dot_dimension_numbers<[2], [1], [1], [2], [0, 0, 0, 1, 1, 2], [0], [0]>} : vector<2x8x8xf32>, vector<2x8x4xf32>, vector<2x8x4xf32> -> vector<2x8x4xf32>
    "tpu.trace_stop"() : () -> ()
    %cst_18 = arith.constant 0.000000e+00 : f32
    %21 = vector.broadcast %cst_18 : f32 to vector<2x8x4xf32>
    %22 = arith.maximumf %20, %21 : vector<2x8x4xf32>
    %23 = vector.shape_cast %22 : vector<2x8x4xf32> to vector<16x4xf32>
    %cst_19 = arith.constant 0.000000e+00 : f32
    %24 = vector.broadcast %cst_19 : f32 to vector<2x1024xf32>
    %c0_20 = arith.constant 0 : index
    %c0_21 = arith.constant 0 : index
    %25 = vector.load %arg13[%c0_20, %c0_21] : memref<2x1024xf32, #tpu.memory_space<vmem>>, vector<2x1024xf32>
    tpu.vector_store %arg13[%c0_20, %c0_21], %24 {strides = array<i32>} : memref<2x1024xf32, #tpu.memory_space<vmem>>, vector<2x1024xf32>,
    %26 = vector.extract_strided_slice %23 {offsets = [0, 0], sizes = [1, 4], strides = [1, 1]} : vector<16x4xf32> to vector<1x4xf32>
    %c0_22 = arith.constant 0 : index
    %c0_23 = arith.constant 0 : index
    %27 = vector.load %arg13[%c0_22, %c0_23] : memref<2x1024xf32, #tpu.memory_space<vmem>>, vector<1x4xf32>
    tpu.vector_store %arg13[%c0_22, %c0_23], %26 {strides = array<i32>} : memref<2x1024xf32, #tpu.memory_space<vmem>>, vector<1x4xf32>,
    %28 = vector.extract_strided_slice %23 {offsets = [1, 0], sizes = [1, 4], strides = [1, 1]} : vector<16x4xf32> to vector<1x4xf32>
    %c0_24 = arith.constant 0 : index
    %c128 = arith.constant 128 : index
    %29 = vector.load %arg13[%c0_24, %c128] : memref<2x1024xf32, #tpu.memory_space<vmem>>, vector<1x4xf32>
    tpu.vector_store %arg13[%c0_24, %c128], %28 {strides = array<i32>} : memref<2x1024xf32, #tpu.memory_space<vmem>>, vector<1x4xf32>,
    %30 = vector.extract_strided_slice %23 {offsets = [2, 0], sizes = [1, 4], strides = [1, 1]} : vector<16x4xf32> to vector<1x4xf32>
    %c0_25 = arith.constant 0 : index
    %c256 = arith.constant 256 : index
    %31 = vector.load %arg13[%c0_25, %c256] : memref<2x1024xf32, #tpu.memory_space<vmem>>, vector<1x4xf32>
    tpu.vector_store %arg13[%c0_25, %c256], %30 {strides = array<i32>} : memref<2x1024xf32, #tpu.memory_space<vmem>>, vector<1x4xf32>,
    %32 = vector.extract_strided_slice %23 {offsets = [3, 0], sizes = [1, 4], strides = [1, 1]} : vector<16x4xf32> to vector<1x4xf32>
    %c0_26 = arith.constant 0 : index
    %c384 = arith.constant 384 : index
    %33 = vector.load %arg13[%c0_26, %c384] : memref<2x1024xf32, #tpu.memory_space<vmem>>, vector<1x4xf32>
    tpu.vector_store %arg13[%c0_26, %c384], %32 {strides = array<i32>} : memref<2x1024xf32, #tpu.memory_space<vmem>>, vector<1x4xf32>,
    %34 = vector.extract_strided_slice %23 {offsets = [4, 0], sizes = [1, 4], strides = [1, 1]} : vector<16x4xf32> to vector<1x4xf32>
    %c0_27 = arith.constant 0 : index
    %c512 = arith.constant 512 : index
    %35 = vector.load %arg13[%c0_27, %c512] : memref<2x1024xf32, #tpu.memory_space<vmem>>, vector<1x4xf32>
    tpu.vector_store %arg13[%c0_27, %c512], %34 {strides = array<i32>} : memref<2x1024xf32, #tpu.memory_space<vmem>>, vector<1x4xf32>,
    %36 = vector.extract_strided_slice %23 {offsets = [5, 0], sizes = [1, 4], strides = [1, 1]} : vector<16x4xf32> to vector<1x4xf32>
    %c0_28 = arith.constant 0 : index
    %c640 = arith.constant 640 : index
    %37 = vector.load %arg13[%c0_28, %c640] : memref<2x1024xf32, #tpu.memory_space<vmem>>, vector<1x4xf32>
    tpu.vector_store %arg13[%c0_28, %c640], %36 {strides = array<i32>} : memref<2x1024xf32, #tpu.memory_space<vmem>>, vector<1x4xf32>,
    %38 = vector.extract_strided_slice %23 {offsets = [6, 0], sizes = [1, 4], strides = [1, 1]} : vector<16x4xf32> to vector<1x4xf32>
    %c0_29 = arith.constant 0 : index
    %c768 = arith.constant 768 : index
    %39 = vector.load %arg13[%c0_29, %c768] : memref<2x1024xf32, #tpu.memory_space<vmem>>, vector<1x4xf32>
    tpu.vector_store %arg13[%c0_29, %c768], %38 {strides = array<i32>} : memref<2x1024xf32, #tpu.memory_space<vmem>>, vector<1x4xf32>,
    %40 = vector.extract_strided_slice %23 {offsets = [7, 0], sizes = [1, 4], strides = [1, 1]} : vector<16x4xf32> to vector<1x4xf32>
    %c0_30 = arith.constant 0 : index
    %c896 = arith.constant 896 : index
    %41 = vector.load %arg13[%c0_30, %c896] : memref<2x1024xf32, #tpu.memory_space<vmem>>, vector<1x4xf32>
    tpu.vector_store %arg13[%c0_30, %c896], %40 {strides = array<i32>} : memref<2x1024xf32, #tpu.memory_space<vmem>>, vector<1x4xf32>,
    %42 = vector.extract_strided_slice %23 {offsets = [8, 0], sizes = [1, 4], strides = [1, 1]} : vector<16x4xf32> to vector<1x4xf32>
    %c1 = arith.constant 1 : index
    %c0_31 = arith.constant 0 : index
    %43 = vector.load %arg13[%c1, %c0_31] : memref<2x1024xf32, #tpu.memory_space<vmem>>, vector<1x4xf32>
    tpu.vector_store %arg13[%c1, %c0_31], %42 {strides = array<i32>} : memref<2x1024xf32, #tpu.memory_space<vmem>>, vector<1x4xf32>,
    %44 = vector.extract_strided_slice %23 {offsets = [9, 0], sizes = [1, 4], strides = [1, 1]} : vector<16x4xf32> to vector<1x4xf32>
    %c1_32 = arith.constant 1 : index
    %c128_33 = arith.constant 128 : index
    %45 = vector.load %arg13[%c1_32, %c128_33] : memref<2x1024xf32, #tpu.memory_space<vmem>>, vector<1x4xf32>
    tpu.vector_store %arg13[%c1_32, %c128_33], %44 {strides = array<i32>} : memref<2x1024xf32, #tpu.memory_space<vmem>>, vector<1x4xf32>,
    %46 = vector.extract_strided_slice %23 {offsets = [10, 0], sizes = [1, 4], strides = [1, 1]} : vector<16x4xf32> to vector<1x4xf32>
    %c1_34 = arith.constant 1 : index
    %c256_35 = arith.constant 256 : index
    %47 = vector.load %arg13[%c1_34, %c256_35] : memref<2x1024xf32, #tpu.memory_space<vmem>>, vector<1x4xf32>
    tpu.vector_store %arg13[%c1_34, %c256_35], %46 {strides = array<i32>} : memref<2x1024xf32, #tpu.memory_space<vmem>>, vector<1x4xf32>,
    %48 = vector.extract_strided_slice %23 {offsets = [11, 0], sizes = [1, 4], strides = [1, 1]} : vector<16x4xf32> to vector<1x4xf32>
    %c1_36 = arith.constant 1 : index
    %c384_37 = arith.constant 384 : index
    %49 = vector.load %arg13[%c1_36, %c384_37] : memref<2x1024xf32, #tpu.memory_space<vmem>>, vector<1x4xf32>
    tpu.vector_store %arg13[%c1_36, %c384_37], %48 {strides = array<i32>} : memref<2x1024xf32, #tpu.memory_space<vmem>>, vector<1x4xf32>,
    %50 = vector.extract_strided_slice %23 {offsets = [12, 0], sizes = [1, 4], strides = [1, 1]} : vector<16x4xf32> to vector<1x4xf32>
    %c1_38 = arith.constant 1 : index
    %c512_39 = arith.constant 512 : index
    %51 = vector.load %arg13[%c1_38, %c512_39] : memref<2x1024xf32, #tpu.memory_space<vmem>>, vector<1x4xf32>
    tpu.vector_store %arg13[%c1_38, %c512_39], %50 {strides = array<i32>} : memref<2x1024xf32, #tpu.memory_space<vmem>>, vector<1x4xf32>,
    %52 = vector.extract_strided_slice %23 {offsets = [13, 0], sizes = [1, 4], strides = [1, 1]} : vector<16x4xf32> to vector<1x4xf32>
    %c1_40 = arith.constant 1 : index
    %c640_41 = arith.constant 640 : index
    %53 = vector.load %arg13[%c1_40, %c640_41] : memref<2x1024xf32, #tpu.memory_space<vmem>>, vector<1x4xf32>
    tpu.vector_store %arg13[%c1_40, %c640_41], %52 {strides = array<i32>} : memref<2x1024xf32, #tpu.memory_space<vmem>>, vector<1x4xf32>,
    %54 = vector.extract_strided_slice %23 {offsets = [14, 0], sizes = [1, 4], strides = [1, 1]} : vector<16x4xf32> to vector<1x4xf32>
    %c1_42 = arith.constant 1 : index
    %c768_43 = arith.constant 768 : index
    %55 = vector.load %arg13[%c1_42, %c768_43] : memref<2x1024xf32, #tpu.memory_space<vmem>>, vector<1x4xf32>
    tpu.vector_store %arg13[%c1_42, %c768_43], %54 {strides = array<i32>} : memref<2x1024xf32, #tpu.memory_space<vmem>>, vector<1x4xf32>,
    %56 = vector.extract_strided_slice %23 {offsets = [15, 0], sizes = [1, 4], strides = [1, 1]} : vector<16x4xf32> to vector<1x4xf32>
    %c1_44 = arith.constant 1 : index
    %c896_45 = arith.constant 896 : index
    %57 = vector.load %arg13[%c1_44, %c896_45] : memref<2x1024xf32, #tpu.memory_space<vmem>>, vector<1x4xf32>
    tpu.vector_store %arg13[%c1_44, %c896_45], %56 {strides = array<i32>} : memref<2x1024xf32, #tpu.memory_space<vmem>>, vector<1x4xf32>,
    %c0_46 = arith.constant 0 : index
    %c0_47 = arith.constant 0 : index
    %58 = vector.load %arg5[%c0_46, %c0_47] : memref<1024x32xf32, #tpu.memory_space<vmem>>, vector<1024x32xf32>
    %c0_48 = arith.constant 0 : index
    %c0_49 = arith.constant 0 : index
    %59 = vector.load %arg6[%c0_48, %c0_49] : memref<1x32xf32, #tpu.memory_space<vmem>>, vector<1x32xf32>
    %c0_50 = arith.constant 0 : index
    %c0_51 = arith.constant 0 : index
    %60 = vector.load %arg13[%c0_50, %c0_51] : memref<2x1024xf32, #tpu.memory_space<vmem>>, vector<2x1024xf32>
    %cst_52 = arith.constant dense<0.000000e+00> : vector<2x32xf32>
    %61 = tpu.matmul %60, %58, %cst_52 {dimension_numbers = #tpu.dot_dimension_numbers<[1], [0], [0], [1], [0, 0, 1, 1], [], []>} : vector<2x1024xf32>, vector<1024x32xf32>, vector<2x32xf32> -> vector<2x32xf32>
    %62 = vector.broadcast %59 : vector<1x32xf32> to vector<2x32xf32>
    %63 = arith.addf %61, %62 : vector<2x32xf32>
    %64 = math.tanh %63 : vector<2x32xf32>
    %c0_53 = arith.constant 0 : index
    %c0_54 = arith.constant 0 : index
    %65 = vector.load %arg7[%c0_53, %c0_54] : memref<32x6xf32, #tpu.memory_space<vmem>>, vector<32x6xf32>
    %c0_55 = arith.constant 0 : index
    %c0_56 = arith.constant 0 : index
    %66 = vector.load %arg8[%c0_55, %c0_56] : memref<1x6xf32, #tpu.memory_space<vmem>>, vector<1x6xf32>
    %cst_57 = arith.constant dense<0.000000e+00> : vector<2x6xf32>
    %67 = tpu.matmul %64, %65, %cst_57 {dimension_numbers = #tpu.dot_dimension_numbers<[1], [0], [0], [1], [0, 0, 1, 1], [], []>} : vector<2x32xf32>, vector<32x6xf32>, vector<2x6xf32> -> vector<2x6xf32>
    %68 = vector.broadcast %66 : vector<1x6xf32> to vector<2x6xf32>
    %69 = arith.addf %67, %68 : vector<2x6xf32>
    %cst_58 = arith.constant dense<0xFF800000> : vector<2xf32>
    %70 = vector.multi_reduction <maximumf>, %69, %cst_58 [1] : vector<2x6xf32> to vector<2xf32>
    %71 = vector.shape_cast %70 : vector<2xf32> to vector<2x1xf32>
    %72 = vector.broadcast %71 : vector<2x1xf32> to vector<2x6xf32>
    %73 = arith.subf %69, %72 : vector<2x6xf32>
    %74 = math.exp %73 : vector<2x6xf32>
    %cst_59 = arith.constant dense<0.000000e+00> : vector<2xf32>
    %75 = vector.multi_reduction <add>, %74, %cst_59 [1] : vector<2x6xf32> to vector<2xf32>
    %76 = vector.shape_cast %75 : vector<2xf32> to vector<2x1xf32>
    %77 = math.log %76 : vector<2x1xf32>
    %78 = vector.broadcast %77 : vector<2x1xf32> to vector<2x6xf32>
    %79 = arith.subf %73, %78 : vector<2x6xf32>
    %80 = tpu.iota {dimensions = array<i32: 1>} : vector<2x6xi32>
    %81 = tpu.iota {dimensions = array<i32: 0>} : vector<2x6xi32>
    %c0_i32 = arith.constant 0 : i32
    %82 = vector.broadcast %c0_i32 : i32 to vector<2x6xi32>
    %c0_i32_60 = arith.constant 0 : i32
    %83 = vector.broadcast %c0_i32_60 : i32 to vector<2x6xi32>
    %84 = arith.cmpi eq, %81, %83 : vector<2x6xi32>
    %c0_61 = arith.constant 0 : index
    %c0_62 = arith.constant 0 : index
    %85 = memref.load %arg9[%c0_61, %c0_62] : memref<2x1xi32, #tpu.memory_space<smem>>
    %86 = vector.broadcast %85 : i32 to vector<2x6xi32>
    %87 = arith.select %84, %86, %82 : vector<2x6xi1>, vector<2x6xi32>
    %c1_i32 = arith.constant 1 : i32
    %88 = vector.broadcast %c1_i32 : i32 to vector<2x6xi32>
    %89 = arith.cmpi eq, %81, %88 : vector<2x6xi32>
    %c1_63 = arith.constant 1 : index
    %c0_64 = arith.constant 0 : index
    %90 = memref.load %arg9[%c1_63, %c0_64] : memref<2x1xi32, #tpu.memory_space<smem>>
    %91 = vector.broadcast %90 : i32 to vector<2x6xi32>
    %92 = arith.select %89, %91, %87 : vector<2x6xi1>, vector<2x6xi32>
    %93 = arith.cmpi eq, %80, %92 : vector<2x6xi32>
    %cst_65 = arith.constant 0.000000e+00 : f32
    %94 = vector.broadcast %cst_65 : f32 to vector<2x6xf32>
    %95 = arith.select %93, %79, %94 : vector<2x6xi1>, vector<2x6xf32>
    %c0_66 = arith.constant 0 : index
    %c0_67 = arith.constant 0 : index
    %96 = vector.load %arg10[%c0_66, %c0_67] : memref<2x6xf32, #tpu.memory_space<vmem>>, vector<2x6xf32>
    tpu.vector_store %arg10[%c0_66, %c0_67], %69 {strides = array<i32>} : memref<2x6xf32, #tpu.memory_space<vmem>>, vector<2x6xf32>,
    %c0_68 = arith.constant 0 : index
    %c0_69 = arith.constant 0 : index
    %97 = vector.load %arg11[%c0_68, %c0_69] : memref<2x6xf32, #tpu.memory_space<vmem>>, vector<2x6xf32>
    tpu.vector_store %arg11[%c0_68, %c0_69], %79 {strides = array<i32>} : memref<2x6xf32, #tpu.memory_space<vmem>>, vector<2x6xf32>,
    %cst_70 = arith.constant dense<0.000000e+00> : vector<2xf32>
    %98 = vector.multi_reduction <add>, %95, %cst_70 [1] : vector<2x6xf32> to vector<2xf32>
    %99 = vector.shape_cast %98 : vector<2xf32> to vector<2x1xf32>
    %c0_71 = arith.constant 0 : index
    %c0_72 = arith.constant 0 : index
    %100 = vector.load %arg12[%c0_71, %c0_72] : memref<2x1xf32, #tpu.memory_space<vmem>>, vector<2x1xf32>
    tpu.vector_store %arg12[%c0_71, %c0_72], %99 {strides = array<i32>} : memref<2x1xf32, #tpu.memory_space<vmem>>, vector<2x1xf32>,
    return
  }
}

</mosaic_0001>

<bundles_post_ra>
// kernel: tpu_custom_call.1
= control target key start
LH: loop header
LB: loop body
LE: loop exit
PB: predicated region body
PF: predicated region fallthrough
CT: control target
= control target key end

     0   :  { %18 = vsyncpa [#allocation5], 0  ;;  %s1456_s0 = inlined_call_operand.vmem [shape: f32[2,8,8], index: 0, kind: input, shape index: {}]   ;;  %s1457_s1 = inlined_call_operand.vmem [shape: f32[2,8,4], index: 1, kind: input, shape index: {}]   ;;  %s1458_s2 = inlined_call_operand.vmem [shape: f32[4,16], index: 2, kind: input, shape index: {}]   ;;  %s1459_s3 = inlined_call_operand.vmem [shape: f32[16,16], index: 3, kind: input, shape index: {}]   ;;  %s1460_s4 = inlined_call_operand.vmem [shape: f32[16,4], index: 4, kind: input, shape index: {}]   ;;  %s1461_s5 = inlined_call_operand.vmem [shape: f32[1024,32], index: 5, kind: input, shape index: {}]   ;;  %s1462_s6 = inlined_call_operand.vmem [shape: f32[1,32], index: 6, kind: input, shape index: {}]   ;;  %s1463_s7 = inlined_call_operand.vmem [shape: f32[32,6], index: 7, kind: input, shape index: {}]   ;;  %s1464_s8 = inlined_call_operand.vmem [shape: f32[1,6], index: 8, kind: input, shape index: {}]   ;;  %s1465_s9 = inlined_call_operand.vmem [shape: s32[2,1], index: 9, kind: input, shape index: {}]   ;;  %s1466_s10 = inlined_call_operand.hbm [shape: f32[2,6], index: 10, kind: output, shape index: {0}]   ;;  %s1467_s11 = inlined_call_operand.hbm [shape: f32[2,6], index: 11, kind: output, shape index: {1}]   ;;  %s1468_s12 = inlined_call_operand.vmem [shape: f32[2,1], index: 12, kind: output, shape index: {2}]  }
   0x1   :  { %19 = vsyncpa [#allocation4], 0 }
   0x2   :  { %20 = vsyncpa [#allocation8], 0  ;;  %s44_s23 = sshll.u32 %s1465_s9, 4  ;;  %s895_s24 = smov [#allocation3]   ;;  %s45_s23 = int_to_ptr.vmem [resolvable:$true] %s44_s23 }
   0x3   :  { %47 = dma.vmem_to_smem %s45_s23, 32, %s895_s24, [#allocation5]  }
   0x4   :  { %889 = dma.done.wait [#allocation5], 32  }
   0x5   :  { %890 = vsyncadd [#allocation5], 4294967264 }
   0x6   :  { %52 = sfence }
   0x7   :  { %v57_v0 = vld [vmem:[%s1458_s2] sm:$0xf]  ;;  %vm65_vm0 = vcmask 1043456   ;;  %vm58_vm1 = vcmask 31744   ;;  %v56_v2 = vld [vmem:[%s1457_s1 + $0x8] sm:$0xff]  ;;  %vm92_vm2 = vcmask 64512  }
   0x8   :  { %v55_v1 = vld [vmem:[%s1457_s1] sm:$0xff]  ;;  %794 = vmatpush.msk.msra.mxu0 %vm65_vm0, %v57_v0  ;;  %v54_v5 = vld [vmem:[%s1456_s0 + $0x8] sm:$0xff]  ;;  %vm143_vm3 = vcmask 130048   ;;  %v896_v23 = vmov 0.0   ;;  %vm290_vm4 = vcmask 24576   ;;  %v390_v32 = vld [vmem:[%s1461_s5 + $0x78] sm:$0xff] }
   0x9   :  { %795 = vmatmul.msk.f32.vlgmr.msra.gmra.mxu0 %vm58_vm1, %v55_v1  ;;  %v53_v3 = vld [vmem:[%s1456_s0] sm:$0xff]  ;;  %v142_v7 = vld [vmem:[%s1459_s3 + $0x8] sm:$0xff]  ;;  %288 = vst [vmem:[#allocation2] sm:$0xff] %v896_v23  ;;  %v406_v33 = vld [vmem:[%s1461_s5 + $0xf8] sm:$0xff]  ;;  %vm699_vm5 = vcmask 261120   ;;  %vm723_vm6 = vcmask 41984  }
   0xa   :  { %164 = vmatpush.msra.mxu3 %v142_v7  ;;  %v141_v8 = vld [vmem:[%s1459_s3] sm:$0xff]  ;;  %v216_v13 = vld [vmem:[%s1460_s4 + $0x8] sm:$0xff]  ;;  %289 = vst [vmem:[#allocation2 + $0x8] sm:$0xff] %v896_v23  ;;  %v422_v34 = vld [vmem:[%s1461_s5 + $0x178] sm:$0xff]  ;;  %s741_s20 = sld [smem:[#allocation3]]  ;;  %s764_s25 = sshll.u32 %s1466_s10, 4  ;;  %s765_s25 = int_to_ptr.hbm [resolvable:$true] %s764_s25 }
   0xb   :  { %237 = vmatpush.msrb.mxu0 %v216_v13  ;;  %v215_v16 = vld [vmem:[%s1460_s4] sm:$0xff]  ;;  %v438_v36 = vld [vmem:[%s1461_s5 + $0x1f8] sm:$0xff]  ;;  %v389_v38 = vld [vmem:[%s1461_s5 + $0x70] sm:$0xff]  ;;  %s816_s21 = sld [smem:[#allocation3 + $0x80]]  ;;  %s898_s26 = smov [#allocation7]   ;;  %vm755_vm10 = vcmask 1024  }
   0xc   :  { %165 = vmatpush.msra.mxu3 %v141_v8  ;;  %v405_v39 = vld [vmem:[%s1461_s5 + $0xf0] sm:$0xff]  ;;  %v388_v42 = vld [vmem:[%s1461_s5 + $0x68] sm:$0xff]  ;;  %v387_v46 = vld [vmem:[%s1461_s5 + $0x60] sm:$0xff]  ;;  %s773_s27 = sshll.u32 %s898_s26, 4  ;;  %s775_s9 = sshll.u32 %s1467_s11, 4  ;;  %s774_s27 = int_to_ptr.vmem [resolvable:$true] %s773_s27  ;;  %s776_s9 = int_to_ptr.hbm [resolvable:$true] %s775_s9 }
   0xd   :  { %238 = vmatpush.msrb.mxu0 %v215_v16  ;;  %v421_v40 = vld [vmem:[%s1461_s5 + $0x170] sm:$0xff]  ;;  %v404_v43 = vld [vmem:[%s1461_s5 + $0xe8] sm:$0xff]  ;;  %v403_v47 = vld [vmem:[%s1461_s5 + $0xe0] sm:$0xff] }
   0xe   :  { %530 = vmatpush.msrb.mxu3 %v390_v32  ;;  %v437_v41 = vld [vmem:[%s1461_s5 + $0x1f0] sm:$0xff]  ;;  %v420_v44 = vld [vmem:[%s1461_s5 + $0x168] sm:$0xff]  ;;  %v419_v48 = vld [vmem:[%s1461_s5 + $0x160] sm:$0xff] }
   0xf   :  { %550 = vmatpush.msra.mxu0 %v406_v33  ;;  %v436_v45 = vld [vmem:[%s1461_s5 + $0x1e8] sm:$0xff]  ;;  %v435_v49 = vld [vmem:[%s1461_s5 + $0x1e0] sm:$0xff]  ;;  %v386_v50 = vld [vmem:[%s1461_s5 + $0x58] sm:$0xff] }
  0x10   :  { %531 = vmatpush.msrb.mxu3 %v389_v38  ;;  %v402_v51 = vld [vmem:[%s1461_s5 + $0xd8] sm:$0xff]  ;;  %v385_v55 = vld [vmem:[%s1461_s5 + $0x50] sm:$0xff]  ;;  %v384_v60 = vld [vmem:[%s1461_s5 + $0x48] sm:$0xff] }
  0x11   :  { %796 = vmatmul.msk.f32.gmra.mxu0 %vm58_vm1, %v56_v2  ;;  %v418_v52 = vld [vmem:[%s1461_s5 + $0x158] sm:$0xff]  ;;  %v401_v56 = vld [vmem:[%s1461_s5 + $0xd0] sm:$0xff]  ;;  %v400_v61 = vld [vmem:[%s1461_s5 + $0xc8] sm:$0xff] }
  0x12   :  { %551 = vmatpush.msra.mxu0 %v405_v39  ;;  %532 = vmatpush.msrb.mxu3 %v388_v42  ;;  %v434_v53 = vld [vmem:[%s1461_s5 + $0x1d8] sm:$0xff]  ;;  %v417_v58 = vld [vmem:[%s1461_s5 + $0x150] sm:$0xff]  ;;  %v416_v62 = vld [vmem:[%s1461_s5 + $0x148] sm:$0xff] }
  0x13   :  { %v433_v59 = vld [vmem:[%s1461_s5 + $0x1d0] sm:$0xff]  ;;  %v432_v63 = vld [vmem:[%s1461_s5 + $0x1c8] sm:$0xff]  ;;  %v383_v0 = vld [vmem:[%s1461_s5 + $0x40] sm:$0xff] }
  0x14   :  { %552 = vmatpush.msra.mxu0 %v404_v43  ;;  %533 = vmatpush.msrb.mxu3 %v387_v46  ;;  %v399_v1 = vld [vmem:[%s1461_s5 + $0xc0] sm:$0xff]  ;;  %v430_v7 = vld [vmem:[%s1461_s5 + $0x1b8] sm:$0xff]  ;;  %v380_v13 = vld [vmem:[%s1461_s5 + $0x28] sm:$0xff] }
  0x15   :  { %v415_v2 = vld [vmem:[%s1461_s5 + $0x140] sm:$0xff]  ;;  %v428_v16 = vld [vmem:[%s1461_s5 + $0x1a8] sm:$0xff]  ;;  %v410_v23 = vld [vmem:[%s1461_s5 + $0x118] sm:$0xff] }
  0x16   :  { %553 = vmatpush.msra.mxu0 %v403_v47  ;;  %534 = vmatpush.msrb.mxu3 %v386_v50  ;;  %v376_v32 = vld [vmem:[%s1461_s5 + $0x8] sm:$0xff]  ;;  %v407_v38 = vld [vmem:[%s1461_s5 + $0x100] sm:$0xff]  ;;  %v486_v42 = vld [vmem:[%s1461_s5 + $0x378] sm:$0xff] }
  0x17   :  { %v392_v33 = vld [vmem:[%s1461_s5 + $0x88] sm:$0xff]  ;;  %v423_v39 = vld [vmem:[%s1461_s5 + $0x180] sm:$0xff]  ;;  %v502_v43 = vld [vmem:[%s1461_s5 + $0x3f8] sm:$0xff] }
  0x18   :  { %554 = vmatpush.msra.mxu0 %v402_v51  ;;  %535 = vmatpush.msrb.mxu3 %v385_v55  ;;  %v485_v46 = vld [vmem:[%s1461_s5 + $0x370] sm:$0xff]  ;;  %v484_v51 = vld [vmem:[%s1461_s5 + $0x368] sm:$0xff]  ;;  %v483_v55 = vld [vmem:[%s1461_s5 + $0x360] sm:$0xff] }
  0x19   :  { %v501_v47 = vld [vmem:[%s1461_s5 + $0x3f0] sm:$0xff] }
  0x1a   :  { %555 = vmatpush.msra.mxu0 %v401_v56  ;;  %536 = vmatpush.msrb.mxu3 %v384_v60  ;;  %v499_v56 = vld [vmem:[%s1461_s5 + $0x3e0] sm:$0xff]  ;;  %v498_v60 = vld [vmem:[%s1461_s5 + $0x3d8] sm:$0xff] }
  0x1c   :  { %556 = vmatpush.msra.mxu0 %v400_v61  ;;  %537 = vmatpush.msrb.mxu3 %v383_v0  ;;  %v449_v61 = vld [vmem:[%s1461_s5 + $0x250] sm:$0xff] }
  0x1d   :  { %v497_v0 = vld [vmem:[%s1461_s5 + $0x3d0] sm:$0xff] }
  0x1e   :  { %557 = vmatpush.msra.mxu0 %v399_v1  ;;  %v448_v1 = vld [vmem:[%s1461_s5 + $0x248] sm:$0xff] }
  0x86   :  { %v86_v4 = vpop.f32.mrf.mxu0 }
  0x87   :  { %111 = vmatpush.msra.mxu1 %v86_v4  ;;  %v382_v4 = vld [vmem:[%s1461_s5 + $0x38] sm:$0xff] }
  0x88   :  { %797 = vmatmul.msk.f32.vlgmr.msra.gmra.mxu1 %vm92_vm2, %v53_v3  ;;  %538 = vmatpush.msrb.mxu3 %v382_v4  ;;  %v480_v4 = vld [vmem:[%s1461_s5 + $0x348] sm:$0xff] }
  0x8e   :  { %v89_v6 = vpop.f32.mrf.mxu0 }
  0x8f   :  { %134 = vmatpush.msra.mxu2 %v89_v6  ;;  %v414_v6 = vld [vmem:[%s1461_s5 + $0x138] sm:$0xff] }
  0x90   :  { %798 = vmatmul.msk.f32.vlgmr.msra.gmra.mxu2 %vm92_vm2, %v54_v5 }
 0x105   :  { %v113_v9 = vpop.f32.mrf.mxu1 }
 0x106   :  { %v139_v10 = vmax.f32 %v113_v9, 0.0  ;;  %v381_v9 = vld [vmem:[%s1461_s5 + $0x30] sm:$0xff] }
 0x107   :  { %539 = vmatpush.msrb.mxu3 %v381_v9  ;;  %v479_v9 = vld [vmem:[%s1461_s5 + $0x340] sm:$0xff] }
 0x108   :  { %799 = vmatmul.msk.f32.vlgmr.msra.gmra.mxu3 %vm143_vm3, %v139_v10  ;;  %v397_v10 = vld [vmem:[%s1461_s5 + $0xb0] sm:$0xff] }
 0x109   :  { %540 = vmatpush.msrb.mxu3 %v380_v13  ;;  %v478_v13 = vld [vmem:[%s1461_s5 + $0x338] sm:$0xff] }
 0x113   :  { %v136_v11 = vpop.f32.mrf.mxu2 }
 0x114   :  { %v140_v12 = vmax.f32 %v136_v11, 0.0  ;;  %v413_v11 = vld [vmem:[%s1461_s5 + $0x130] sm:$0xff] }
 0x116   :  { %800 = vmatmul.msk.f32.gmra.mxu3 %vm143_vm3, %v140_v12  ;;  %v429_v12 = vld [vmem:[%s1461_s5 + $0x1b0] sm:$0xff] }
 0x18b   :  { %v167_v14 = vpop.f32.mrf.mxu3 }
 0x18c   :  { %188 = vmatpush.msrb.mxu1 %v167_v14  ;;  %v396_v14 = vld [vmem:[%s1461_s5 + $0xa8] sm:$0xff] }
 0x18d   :  { %801 = vmatmul.msk.f32.vlgmr.msrb.gmra.mxu1 %vm92_vm2, %v53_v3 }
 0x199   :  { %v170_v15 = vpop.f32.mrf.mxu3 }
 0x19a   :  { %208 = vmatpush.msrb.mxu2 %v170_v15  ;;  %v412_v15 = vld [vmem:[%s1461_s5 + $0x128] sm:$0xff] }
 0x19b   :  { %802 = vmatmul.msk.f32.vlgmr.msrb.gmra.mxu2 %vm92_vm2, %v54_v5 }
 0x20a   :  { %v190_v17 = vpop.f32.mrf.mxu1 }
 0x20b   :  { %v213_v18 = vmax.f32 %v190_v17, 0.0  ;;  %v379_v17 = vld [vmem:[%s1461_s5 + $0x20] sm:$0xff] }
 0x20c   :  { %541 = vmatpush.msrb.mxu3 %v379_v17  ;;  %v477_v17 = vld [vmem:[%s1461_s5 + $0x330] sm:$0xff] }
 0x20d   :  { %803 = vmatmul.msk.f32.vlgmr.msrb.gmra.mxu0 %vm143_vm3, %v213_v18  ;;  %v395_v18 = vld [vmem:[%s1461_s5 + $0xa0] sm:$0xff] }
 0x21e   :  { %v210_v19 = vpop.f32.mrf.mxu2 }
 0x21f   :  { %v214_v20 = vmax.f32 %v210_v19, 0.0  ;;  %v411_v19 = vld [vmem:[%s1461_s5 + $0x120] sm:$0xff] }
 0x221   :  { %804 = vmatmul.msk.f32.gmra.mxu0 %vm143_vm3, %v214_v20  ;;  %v427_v20 = vld [vmem:[%s1461_s5 + $0x1a0] sm:$0xff] }
 0x28a   :  { %v240_v21 = vpop.f32.mrf.mxu0 }
 0x28b   :  { %261 = vmatpush.msra.mxu1 %v240_v21  ;;  %v378_v21 = vld [vmem:[%s1461_s5 + $0x18] sm:$0xff] }
 0x28c   :  { %805 = vmatmul.msk.f32.vlgmr.msra.gmra.mxu1 %vm92_vm2, %v53_v3  ;;  %v431_v3 = vld [vmem:[%s1461_s5 + $0x1c0] sm:$0xff]  ;;  %542 = vmatpush.msrb.mxu3 %v378_v21 }
 0x28d   :  { %570 = vmatpush.msrb.mxu1 %v422_v34  ;;  %v408_v34 = vld [vmem:[%s1461_s5 + $0x108] sm:$0xff] }
 0x28f   :  { %571 = vmatpush.msrb.mxu1 %v421_v40  ;;  %v454_v40 = vld [vmem:[%s1461_s5 + $0x278] sm:$0xff] }
 0x291   :  { %572 = vmatpush.msrb.mxu1 %v420_v44  ;;  %v453_v44 = vld [vmem:[%s1461_s5 + $0x270] sm:$0xff] }
 0x293   :  { %573 = vmatpush.msrb.mxu1 %v419_v48  ;;  %v452_v48 = vld [vmem:[%s1461_s5 + $0x268] sm:$0xff] }
 0x295   :  { %574 = vmatpush.msrb.mxu1 %v418_v52  ;;  %v500_v52 = vld [vmem:[%s1461_s5 + $0x3e8] sm:$0xff] }
 0x297   :  { %575 = vmatpush.msrb.mxu1 %v417_v58  ;;  %v466_v58 = vld [vmem:[%s1461_s5 + $0x2d8] sm:$0xff] }
 0x299   :  { %576 = vmatpush.msrb.mxu1 %v416_v62  ;;  %v465_v62 = vld [vmem:[%s1461_s5 + $0x2d0] sm:$0xff] }
 0x29b   :  { %577 = vmatpush.msrb.mxu1 %v415_v2  ;;  %v464_v2 = vld [vmem:[%s1461_s5 + $0x2c8] sm:$0xff] }
 0x29d   :  { %578 = vmatpush.msrb.mxu1 %v414_v6 }
 0x29e   :  { %v243_v22 = vpop.f32.mrf.mxu0 }
 0x29f   :  { %281 = vmatpush.msra.mxu2 %v243_v22  ;;  %579 = vmatpush.msrb.mxu1 %v413_v11  ;;  %v394_v22 = vld [vmem:[%s1461_s5 + $0x98] sm:$0xff] }
 0x2a0   :  { %806 = vmatmul.msk.f32.vlgmr.msra.gmra.mxu2 %vm92_vm2, %v54_v5  ;;  %v398_v5 = vld [vmem:[%s1461_s5 + $0xb8] sm:$0xff] }
 0x2a1   :  { %590 = vmatpush.msrb.mxu2 %v438_v36  ;;  %558 = vmatpush.msra.mxu0 %v398_v5  ;;  %v375_v36 = vld [vmem:[%s1461_s5] sm:$0xff]  ;;  %v496_v5 = vld [vmem:[%s1461_s5 + $0x3c8] sm:$0xff]  ;;  %v446_v11 = vld [vmem:[%s1461_s5 + $0x238] sm:$0xff] }
 0x2a2   :  { %580 = vmatpush.msrb.mxu1 %v412_v15  ;;  %v445_v15 = vld [vmem:[%s1461_s5 + $0x230] sm:$0xff] }
 0x2a3   :  { %591 = vmatpush.msrb.mxu2 %v437_v41  ;;  %559 = vmatpush.msra.mxu0 %v397_v10  ;;  %v470_v41 = vld [vmem:[%s1461_s5 + $0x2f8] sm:$0xff]  ;;  %v495_v10 = vld [vmem:[%s1461_s5 + $0x3c0] sm:$0xff] }
 0x2a4   :  { %581 = vmatpush.msrb.mxu1 %v411_v19  ;;  %v444_v19 = vld [vmem:[%s1461_s5 + $0x228] sm:$0xff] }
 0x2a5   :  { %592 = vmatpush.msrb.mxu2 %v436_v45  ;;  %560 = vmatpush.msra.mxu0 %v396_v14  ;;  %v469_v45 = vld [vmem:[%s1461_s5 + $0x2f0] sm:$0xff]  ;;  %v494_v14 = vld [vmem:[%s1461_s5 + $0x3b8] sm:$0xff] }
 0x2a6   :  { %582 = vmatpush.msrb.mxu1 %v410_v23  ;;  %v492_v23 = vld [vmem:[%s1461_s5 + $0x3a8] sm:$0xff] }
 0x2a7   :  { %593 = vmatpush.msrb.mxu2 %v435_v49  ;;  %561 = vmatpush.msra.mxu0 %v395_v18  ;;  %v468_v49 = vld [vmem:[%s1461_s5 + $0x2e8] sm:$0xff]  ;;  %v493_v18 = vld [vmem:[%s1461_s5 + $0x3b0] sm:$0xff] }
 0x2a9   :  { %594 = vmatpush.msrb.mxu2 %v434_v53  ;;  %562 = vmatpush.msra.mxu0 %v394_v22  ;;  %v451_v53 = vld [vmem:[%s1461_s5 + $0x260] sm:$0xff]  ;;  %v476_v22 = vld [vmem:[%s1461_s5 + $0x328] sm:$0xff] }
 0x2ab   :  { %595 = vmatpush.msrb.mxu2 %v433_v59  ;;  %v482_v59 = vld [vmem:[%s1461_s5 + $0x358] sm:$0xff] }
 0x2ad   :  { %596 = vmatpush.msrb.mxu2 %v432_v63  ;;  %v481_v63 = vld [vmem:[%s1461_s5 + $0x350] sm:$0xff] }
 0x2af   :  { %597 = vmatpush.msrb.mxu2 %v431_v3 }
 0x2b1   :  { %598 = vmatpush.msrb.mxu2 %v430_v7  ;;  %v447_v7 = vld [vmem:[%s1461_s5 + $0x240] sm:$0xff] }
 0x2b3   :  { %599 = vmatpush.msrb.mxu2 %v429_v12  ;;  %v462_v12 = vld [vmem:[%s1461_s5 + $0x2b8] sm:$0xff] }
 0x2b5   :  { %600 = vmatpush.msrb.mxu2 %v428_v16  ;;  %v461_v16 = vld [vmem:[%s1461_s5 + $0x2b0] sm:$0xff] }
 0x2b7   :  { %601 = vmatpush.msrb.mxu2 %v427_v20  ;;  %v460_v20 = vld [vmem:[%s1461_s5 + $0x2a8] sm:$0xff] }
 0x309   :  { %v263_v24 = vpop.f32.mrf.mxu1 }
 0x30a   :  { %v1004_v25 = vmax.f32 %v263_v24, 0.0  ;;  %v426_v24 = vld [vmem:[%s1461_s5 + $0x198] sm:$0xff] }
 0x30b   :  { %602 = vmatpush.msrb.mxu2 %v426_v24  ;;  %v443_v24 = vld [vmem:[%s1461_s5 + $0x220] sm:$0xff] }
 0x30c   :  { %291 = vst.msk [vmem:[#allocation2] sm:$0x1] %vm290_vm4, %v1004_v25  ;;  %v807_v26 = vrot.slane %v1004_v25, 9 }
 0x30d   :  { %297 = vst.sshfl [vmem:[#allocation1] sm:$0xff pattern:$0x73625140] %v1004_v25 }
 0x30e   :  { %296 = vst.msk [vmem:[#allocation2 + $0x2] sm:$0x1] %vm290_vm4, %v807_v26  ;;  %v393_v26 = vld [vmem:[%s1461_s5 + $0x90] sm:$0xff] }
 0x30f   :  { %563 = vmatpush.msra.mxu0 %v393_v26  ;;  %v475_v26 = vld [vmem:[%s1461_s5 + $0x320] sm:$0xff] }
 0x311   :  { %564 = vmatpush.msra.mxu0 %v392_v33  ;;  %v441_v33 = vld [vmem:[%s1461_s5 + $0x210] sm:$0xff] }
 0x314   :  { %v299_v27 = vld [vmem:[#allocation1 + $0x1] ss:$4 sm:$0xff] }
 0x315   :  { %301 = vst.msk [vmem:[#allocation2 + $0x4] sm:$0x1] %vm290_vm4, %v299_v27  ;;  %v409_v27 = vld [vmem:[%s1461_s5 + $0x110] sm:$0xff] }
 0x316   :  { %302 = vst.sshfl [vmem:[#allocation1] sm:$0xff pattern:$0x73625140] %v1004_v25  ;;  %583 = vmatpush.msrb.mxu1 %v409_v27  ;;  %v491_v27 = vld [vmem:[%s1461_s5 + $0x3a0] sm:$0xff] }
 0x318   :  { %584 = vmatpush.msrb.mxu1 %v408_v34  ;;  %v457_v34 = vld [vmem:[%s1461_s5 + $0x290] sm:$0xff] }
 0x31a   :  { %585 = vmatpush.msrb.mxu1 %v407_v38  ;;  %v456_v38 = vld [vmem:[%s1461_s5 + $0x288] sm:$0xff] }
 0x31c   :  { %650 = vmatpush.msra.mxu1 %v486_v42  ;;  %v439_v42 = vld [vmem:[%s1461_s5 + $0x200] sm:$0xff] }
 0x31d   :  { %v304_v28 = vld [vmem:[#allocation1 + $0x1] ss:$4 sm:$0xff] }
 0x31e   :  { %v808_v29 = vrot.slane %v304_v28, 9  ;;  %309 = vst.sshfl [vmem:[#allocation1] sm:$0xff pattern:$0x73625140] %v1004_v25  ;;  %651 = vmatpush.msra.mxu1 %v485_v46  ;;  %v487_v46 = vld [vmem:[%s1461_s5 + $0x380] sm:$0xff] }
 0x320   :  { %308 = vst.msk [vmem:[#allocation2 + $0x6] sm:$0x1] %vm290_vm4, %v808_v29  ;;  %v425_v29 = vld [vmem:[%s1461_s5 + $0x190] sm:$0xff]  ;;  %652 = vmatpush.msra.mxu1 %v484_v51 }
 0x321   :  { %603 = vmatpush.msrb.mxu2 %v425_v29  ;;  %v458_v29 = vld [vmem:[%s1461_s5 + $0x298] sm:$0xff] }
 0x322   :  { %653 = vmatpush.msra.mxu1 %v483_v55 }
 0x323   :  { %v283_v30 = vpop.f32.mrf.mxu2 }
 0x324   :  { %v1015_v31 = vmax.f32 %v283_v30, 0.0  ;;  %654 = vmatpush.msra.mxu1 %v482_v59  ;;  %v694_v59 = vld [vmem:[%s1463_s7 + $0x18] sm:$0xff] }
 0x325   :  { %v311_v35 = vld [vmem:[#allocation1 + $0x2] ss:$4 sm:$0xff] }
 0x326   :  { %313 = vst.msk [vmem:[#allocation2 + $0x8] sm:$0x1] %vm290_vm4, %v311_v35  ;;  %v811_v37 = vrot.slane %v1015_v31, 9  ;;  %v424_v35 = vld [vmem:[%s1461_s5 + $0x188] sm:$0xff]  ;;  %655 = vmatpush.msra.mxu1 %v481_v63  ;;  %v821_v63 = vld [vmem:[%s1462_s6] ss:$0 sm:$0xff] }
 0x327   :  { %314 = vst.sshfl [vmem:[#allocation1] sm:$0xff pattern:$0x73625140] %v1004_v25  ;;  %604 = vmatpush.msrb.mxu2 %v424_v35  ;;  %v473_v35 = vld [vmem:[%s1461_s5 + $0x310] sm:$0xff] }
 0x328   :  { %333 = vst.msk [vmem:[#allocation2 + $0x1] sm:$0x1] %vm290_vm4, %v1015_v31  ;;  %656 = vmatpush.msra.mxu1 %v480_v4 }
 0x329   :  { %338 = vst.msk [vmem:[#allocation2 + $0x3] sm:$0x1] %vm290_vm4, %v811_v37  ;;  %v391_v37 = vld [vmem:[%s1461_s5 + $0x80] sm:$0xff]  ;;  %605 = vmatpush.msrb.mxu2 %v423_v39 }
 0x32a   :  { %565 = vmatpush.msra.mxu0 %v391_v37  ;;  %657 = vmatpush.msra.mxu1 %v479_v9  ;;  %v440_v37 = vld [vmem:[%s1461_s5 + $0x208] sm:$0xff] }
 0x32b   :  { %670 = vmatpush.msra.mxu2 %v502_v43  ;;  %v455_v43 = vld [vmem:[%s1461_s5 + $0x280] sm:$0xff] }
 0x32c   :  { %630 = vmatpush.msrb.mxu0 %v470_v41  ;;  %658 = vmatpush.msra.mxu1 %v478_v13  ;;  %v488_v41 = vld [vmem:[%s1461_s5 + $0x388] sm:$0xff] }
 0x32d   :  { %671 = vmatpush.msra.mxu2 %v501_v47 }
 0x32e   :  { %v316_v54 = vld [vmem:[#allocation1 + $0x2] ss:$4 sm:$0xff]  ;;  %631 = vmatpush.msrb.mxu0 %v469_v45  ;;  %659 = vmatpush.msra.mxu1 %v477_v17  ;;  %v822_v17 = vld [vmem:[%s1464_s8] ss:$0 sm:$0xff]  ;;  %s897_s8 = smov [#allocation6]  }
 0x32f   :  { %v809_v57 = vrot.slane %v316_v54, 9  ;;  %321 = vst.sshfl [vmem:[#allocation1] sm:$0xff pattern:$0x73625140] %v1004_v25  ;;  %v467_v54 = vld [vmem:[%s1461_s5 + $0x2e0] sm:$0xff]  ;;  %672 = vmatpush.msra.mxu2 %v500_v52  ;;  %s762_s22 = sshll.u32 %s897_s8, 4  ;;  %s763_s22 = int_to_ptr.vmem [resolvable:$true] %s762_s22 }
 0x330   :  { %632 = vmatpush.msrb.mxu0 %v468_v49  ;;  %660 = vmatpush.msra.mxu1 %v476_v22  ;;  %v471_v45 = vld [vmem:[%s1461_s5 + $0x300] sm:$0xff] }
 0x331   :  { %320 = vst.msk [vmem:[#allocation2 + $0xa] sm:$0x1] %vm290_vm4, %v809_v57  ;;  %v450_v57 = vld [vmem:[%s1461_s5 + $0x258] sm:$0xff]  ;;  %673 = vmatpush.msra.mxu2 %v499_v56 }
 0x332   :  { %633 = vmatpush.msrb.mxu0 %v467_v54  ;;  %661 = vmatpush.msra.mxu1 %v475_v26  ;;  %v736_v26 = vlaneseq }
 0x333   :  { %674 = vmatpush.msra.mxu2 %v498_v60  ;;  %v693_v60 = vld [vmem:[%s1463_s7 + $0x10] sm:$0xff] }
 0x334   :  { %634 = vmatpush.msrb.mxu0 %v466_v58 }
 0x335   :  { %675 = vmatpush.msra.mxu2 %v497_v0 }
 0x336   :  { %v323_v8 = vld [vmem:[#allocation1 + $0x3] ss:$4 sm:$0xff]  ;;  %635 = vmatpush.msrb.mxu0 %v465_v62 }
 0x337   :  { %325 = vst.msk [vmem:[#allocation2 + $0xc] sm:$0x1] %vm290_vm4, %v323_v8  ;;  %676 = vmatpush.msra.mxu2 %v496_v5  ;;  %v463_v8 = vld [vmem:[%s1461_s5 + $0x2c0] sm:$0xff] }
 0x338   :  { %326 = vst.sshfl [vmem:[#allocation1] sm:$0xff pattern:$0x73625140] %v1004_v25  ;;  %v377_v25 = vld [vmem:[%s1461_s5 + $0x10] sm:$0xff]  ;;  %636 = vmatpush.msrb.mxu0 %v464_v2  ;;  %v691_v62 = vld [vmem:[%s1463_s7] sm:$0xff] }
 0x339   :  { %543 = vmatpush.msrb.mxu3 %v377_v25  ;;  %677 = vmatpush.msra.mxu2 %v495_v10  ;;  %v459_v25 = vld [vmem:[%s1461_s5 + $0x2a0] sm:$0xff] }
 0x33a   :  { %637 = vmatpush.msrb.mxu0 %v463_v8 }
 0x33b   :  { %544 = vmatpush.msrb.mxu3 %v376_v32  ;;  %678 = vmatpush.msra.mxu2 %v494_v14  ;;  %v490_v32 = vld [vmem:[%s1461_s5 + $0x398] sm:$0xff] }
 0x33c   :  { %638 = vmatpush.msrb.mxu0 %v462_v12 }
 0x33d   :  { %545 = vmatpush.msrb.mxu3 %v375_v36  ;;  %679 = vmatpush.msra.mxu2 %v493_v18  ;;  %v489_v36 = vld [vmem:[%s1461_s5 + $0x390] sm:$0xff] }
 0x33e   :  { %639 = vmatpush.msrb.mxu0 %v461_v16 }
 0x33f   :  { %v328_v28 = vld [vmem:[#allocation1 + $0x3] ss:$4 sm:$0xff]  ;;  %610 = vmatpush.msra.mxu3 %v454_v40  ;;  %680 = vmatpush.msra.mxu2 %v492_v23 }
 0x340   :  { %v810_v30 = vrot.slane %v328_v28, 9  ;;  %339 = vst.sshfl [vmem:[#allocation1] sm:$0xff pattern:$0x73625140] %v1015_v31  ;;  %640 = vmatpush.msrb.mxu0 %v460_v20  ;;  %v442_v28 = vld [vmem:[%s1461_s5 + $0x218] sm:$0xff]  ;;  %v472_v40 = vld [vmem:[%s1461_s5 + $0x308] sm:$0xff] }
 0x341   :  { %611 = vmatpush.msra.mxu3 %v453_v44  ;;  %681 = vmatpush.msra.mxu2 %v491_v27  ;;  %v739_v27 = vshrl.u32 %v736_v26, 7 }
 0x342   :  { %332 = vst.msk [vmem:[#allocation2 + $0xe] sm:$0x1] %vm290_vm4, %v810_v30  ;;  %641 = vmatpush.msrb.mxu0 %v459_v25  ;;  %v474_v30 = vld [vmem:[%s1461_s5 + $0x318] sm:$0xff] }
 0x343   :  { %612 = vmatpush.msra.mxu3 %v452_v48  ;;  %662 = vmatpush.msra.mxu1 %v474_v30  ;;  %vm740_vm7 = vcmp.eq.s32.totalorder %v739_v27, 0  ;;  %vm744_vm8 = vcmp.eq.s32.totalorder %v739_v27, 1 }
 0x344   :  { %642 = vmatpush.msrb.mxu0 %v458_v29  ;;  %682 = vmatpush.msra.mxu2 %v490_v32  ;;  %v742_v29 = vstv %s741_s20  ;;  %v746_v32 = vstv %s816_s21 }
 0x345   :  { %613 = vmatpush.msra.mxu3 %v451_v53  ;;  %663 = vmatpush.msra.mxu1 %v473_v35  ;;  %v743_v30 = vsel %vm740_vm7, %v742_v29, 0 }
 0x346   :  { %643 = vmatpush.msrb.mxu0 %v457_v34  ;;  %683 = vmatpush.msra.mxu2 %v489_v36  ;;  %v747_v34 = vsel %vm744_vm8, %v746_v32, %v743_v30 }
 0x347   :  { %v341_v50 = vld [vmem:[#allocation1 + $0x1] ss:$4 sm:$0xff]  ;;  %614 = vmatpush.msra.mxu3 %v450_v57  ;;  %664 = vmatpush.msra.mxu1 %v472_v40 }
 0x348   :  { %344 = vst.sshfl [vmem:[#allocation1] sm:$0xff pattern:$0x73625140] %v1015_v31  ;;  %644 = vmatpush.msrb.mxu0 %v456_v38  ;;  %684 = vmatpush.msra.mxu2 %v488_v41 }
 0x349   :  { %343 = vst.msk [vmem:[#allocation2 + $0x5] sm:$0x1] %vm290_vm4, %v341_v50  ;;  %615 = vmatpush.msra.mxu3 %v449_v61  ;;  %665 = vmatpush.msra.mxu1 %v471_v45  ;;  %v692_v61 = vld [vmem:[%s1463_s7 + $0x8] sm:$0xff] }
 0x34a   :  { %645 = vmatpush.msrb.mxu0 %v455_v43  ;;  %685 = vmatpush.msra.mxu2 %v487_v46 }
 0x34b   :  { %616 = vmatpush.msra.mxu3 %v448_v1 }
 0x34d   :  { %617 = vmatpush.msra.mxu3 %v447_v7 }
 0x34f   :  { %v346_v3 = vld [vmem:[#allocation1 + $0x1] ss:$4 sm:$0xff]  ;;  %618 = vmatpush.msra.mxu3 %v446_v11 }
 0x350   :  { %351 = vst.sshfl [vmem:[#allocation1] sm:$0xff pattern:$0x73625140] %v1015_v31  ;;  %v812_v6 = vrot.slane %v346_v3, 9 }
 0x351   :  { %619 = vmatpush.msra.mxu3 %v445_v15 }
 0x352   :  { %350 = vst.msk [vmem:[#allocation2 + $0x7] sm:$0x1] %vm290_vm4, %v812_v6 }
 0x353   :  { %620 = vmatpush.msra.mxu3 %v444_v19 }
 0x355   :  { %621 = vmatpush.msra.mxu3 %v443_v24 }
 0x357   :  { %v353_v21 = vld [vmem:[#allocation1 + $0x2] ss:$4 sm:$0xff]  ;;  %622 = vmatpush.msra.mxu3 %v442_v28 }
 0x358   :  { %356 = vst.sshfl [vmem:[#allocation1] sm:$0xff pattern:$0x73625140] %v1015_v31 }
 0x359   :  { %355 = vst.msk [vmem:[#allocation2 + $0x9] sm:$0x1] %vm290_vm4, %v353_v21  ;;  %623 = vmatpush.msra.mxu3 %v441_v33  ;;  %v504_v48 = vld [vmem:[#allocation2] sm:$0xff]  ;;  %v737_v33 = vand.u32 127, %v736_v26 }
 0x35b   :  { %624 = vmatpush.msra.mxu3 %v440_v37  ;;  %vm748_vm9 = vcmp.eq.s32.totalorder %v737_v33, %v747_v34 }
 0x35d   :  { %625 = vmatpush.msra.mxu3 %v439_v42 }
 0x35f   :  { %v358_v39 = vld [vmem:[#allocation1 + $0x2] ss:$4 sm:$0xff] }
 0x360   :  { %363 = vst.sshfl [vmem:[#allocation1] sm:$0xff pattern:$0x73625140] %v1015_v31  ;;  %v813_v44 = vrot.slane %v358_v39, 9 }
 0x362   :  { %362 = vst.msk [vmem:[#allocation2 + $0xb] sm:$0x1] %vm290_vm4, %v813_v44 }
 0x367   :  { %v365_v47 = vld [vmem:[#allocation1 + $0x3] ss:$4 sm:$0xff] }
 0x368   :  { %368 = vst.sshfl [vmem:[#allocation1] sm:$0xff pattern:$0x73625140] %v1015_v31 }
 0x369   :  { %511 = vst [vmem:[#allocation1] ss:$4 sm:$0xff] %v504_v48 }
 0x36a   :  { %367 = vst.msk [vmem:[#allocation2 + $0xd] sm:$0x1] %vm290_vm4, %v365_v47 }
 0x36f   :  { %v370_v49 = vld [vmem:[#allocation1 + $0x3] ss:$4 sm:$0xff] }
 0x370   :  { %v814_v50 = vrot.slane %v370_v49, 9  ;;  %v514_v51 = vld.sshfl [vmem:[#allocation1] sm:$0xff pattern:$0x73625140] }
 0x371   :  { %546 = vmatmul.f32.vlgmr.msrb.gmra.mxu3 %v514_v51  ;;  %v515_v52 = vld.sshfl [vmem:[#allocation1 + $0x8] sm:$0xff pattern:$0x73625140]  ;;  %v516_v53 = vld.sshfl [vmem:[#allocation1 + $0x10] sm:$0xff pattern:$0x73625140] }
 0x372   :  { %374 = vst.msk [vmem:[#allocation2 + $0xf] sm:$0x1] %vm290_vm4, %v814_v50  ;;  %566 = vmatmul.f32.vlgmr.msra.gmra.mxu0 %v515_v52  ;;  %586 = vmatmul.f32.vlgmr.msrb.gmra.mxu1 %v516_v53  ;;  %v517_v54 = vld.sshfl [vmem:[#allocation1 + $0x18] sm:$0xff pattern:$0x73625140] }
 0x373   :  { %606 = vmatmul.f32.vlgmr.msrb.gmra.mxu2 %v517_v54  ;;  %715 = vmatpush.msrb.mxu3 %v694_v59 }
 0x375   :  { %716 = vmatpush.msrb.mxu3 %v693_v60 }
 0x377   :  { %717 = vmatpush.msrb.mxu3 %v692_v61 }
 0x379   :  { %v505_v55 = vld [vmem:[#allocation2 + $0x8] sm:$0xff]  ;;  %718 = vmatpush.msrb.mxu3 %v691_v62 }
 0x37a   :  { %513 = vst [vmem:[#allocation1 + $0x20] ss:$4 sm:$0xff] %v505_v55 }
 0x381   :  { %v518_v56 = vld.sshfl [vmem:[#allocation1 + $0x20] sm:$0xff pattern:$0x73625140]  ;;  %v519_v31 = vld.sshfl [vmem:[#allocation1 + $0x28] sm:$0xff pattern:$0x73625140] }
 0x382   :  { %626 = vmatmul.f32.vlgmr.msra.gmra.mxu3 %v518_v56  ;;  %646 = vmatmul.f32.vlgmr.msrb.gmra.mxu0 %v519_v31  ;;  %v520_v57 = vld.sshfl [vmem:[#allocation1 + $0x30] sm:$0xff pattern:$0x73625140]  ;;  %v521_v58 = vld.sshfl [vmem:[#allocation1 + $0x38] sm:$0xff pattern:$0x73625140] }
 0x383   :  { %666 = vmatmul.f32.vlgmr.msra.gmra.mxu1 %v520_v57  ;;  %686 = vmatmul.f32.vlgmr.msra.gmra.mxu2 %v521_v58 }
 0x3ef   :  { %v567_v2 = vpop.f32.mrf.mxu0  ;;  %v587_v4 = vpop.f32.mrf.mxu1 }
 0x3f4   :  { %v547_v0 = vpop.f32.mrf.mxu3 }
 0x3f5   :  { %v548_v1 = vadd.f32 %v821_v63, %v547_v0 }
 0x3f6   :  { %v607_v6 = vpop.f32.mrf.mxu2 }
 0x3f7   :  { %v568_v3 = vadd.f32 %v567_v2, %v548_v1 }
 0x3f9   :  { %v588_v5 = vadd.f32 %v587_v4, %v568_v3 }
 0x3fb   :  { %v608_v7 = vadd.f32 %v607_v6, %v588_v5 }
 0x3ff   :  { %v647_v10 = vpop.f32.mrf.mxu0 }
 0x400   :  { %v667_v12 = vpop.f32.mrf.mxu1 }
 0x405   :  { %v627_v8 = vpop.f32.mrf.mxu3 }
 0x406   :  { %v628_v9 = vadd.f32 %v627_v8, %v608_v7  ;;  %v687_v14 = vpop.f32.mrf.mxu2 }
 0x408   :  { %v648_v11 = vadd.f32 %v647_v10, %v628_v9 }
 0x40a   :  { %v668_v13 = vadd.f32 %v667_v12, %v648_v11 }
 0x40c   :  { %v688_v15 = vadd.f32 %v687_v14, %v668_v13 }
 0x40e   :  { %823 = vtanh.f32 %v688_v15 }
 0x414   :  { %v824_v16 = vpop.eup %823 }
 0x415   :  { %815 = vmatmul.msk.f32.vlgmr.msrb.gmra.mxu3 %vm699_vm5, %v824_v16 }
 0x498   :  { %v720_v18 = vpop.f32.mrf.mxu3 }
 0x499   :  { %v721_v19 = vadd.f32 %v822_v17, %v720_v18 }
 0x49b   :  { %v724_v20 = vsel %vm723_vm6, %v721_v19, -inf  ;;  %750 = vst.msk [vmem:[#allocation6] sm:$0x3] %vm723_vm6, %v721_v19 }
 0x49c   :  { %725 = vmax.xlane.f32.xlu0 %v724_v20  ;;  %767 = dma.vmem_to_hbm [thread:$0]  %s763_s22, 32, %s765_s25, [#allocation4]  }
 0x50f   :  { %v726_v21 = vpop.xlane.xlu0 %725 }
 0x510   :  { %v727_v22 = vsub.f32 %v721_v19, %v726_v21 }
 0x512   :  { %v728_v23 = vmul.f32 1.442695, %v727_v22 }
 0x514   :  { %825 = vpow2.f32 %v728_v23 }
 0x51a   :  { %v826_v24 = vpop.eup %825 }
 0x51b   :  { %v730_v25 = vsel %vm723_vm6, %v826_v24, 0.0 }
 0x51c   :  { %731 = vadd.xlane.f32.xlu0 %v730_v25 }
 0x58f   :  { %v732_v28 = vpop.xlane.xlu0 %731 }
 0x590   :  { %827 = vlog2.f32 %v732_v28 }
 0x596   :  { %v828_v35 = vpop.eup %827 }
 0x597   :  { %v734_v36 = vmul.f32 0.6931472, %v828_v35 }
 0x599   :  { %v735_v37 = vsub.f32 %v727_v22, %v734_v36 }
 0x59b   :  { %v749_v38 = vsel %vm748_vm9, %v735_v37, 0.0  ;;  %751 = vst.msk [vmem:[#allocation7] sm:$0x3] %vm723_vm6, %v735_v37 }
 0x59c   :  { %v752_v39 = vsel %vm723_vm6, %v749_v38, 0.0  ;;  %778 = dma.vmem_to_hbm [thread:$0]  %s774_s27, 32, %s776_s9, [#allocation8]  }
 0x59d   :  { %753 = vadd.xlane.f32.xlu1 %v752_v39 }
 0x610   :  { %v754_v40 = vpop.xlane.xlu1 %753 }
 0x611   :  { %756 = vst.msk [vmem:[%s1468_s12] sm:$0x3] %vm755_vm10, %v754_v40 }
 0x612   :  { %891 = dma.done.wait [#allocation4], 32  }
 0x613   :  { %892 = vsyncadd [#allocation4], 4294967264 }
 0x614   :  { %893 = dma.done.wait [#allocation8], 32  }
 0x615   :  { %894 = vsyncadd [#allocation8], 4294967264 }
 0x616   :  { %791 = vsyncpa [#allocation4], 1 }
 0x617   :  { %792 = vsyncpa [#allocation8], 1 }
 0x618   :  { %793 = vsyncpa [#allocation5], 1 }

</bundles_post_ra>
